<compile_context>
chip_gen: v5e
topology: v5e:2x2
jax: 0.10.0
libtpu: 0.0.40
codegen_flags: <defaults>
</compile_context>

<pallas_src>
import jax
import jax.numpy as jnp
from jax.experimental import pallas as pl
from jax.experimental.pallas import tpu as pltpu


def seqmix_kernel(h_ref, a_ref, p_ref, win_ref, bin_ref, w0_ref, b0_ref,
                  w1_ref, b1_ref, out_ref):
    f32 = jnp.float32
    h = h_ref[...]                                           # [TM, 128] node tile
    # f_in: Linear(117->128, zero-padded K) + Tanh
    h = jnp.tanh(
        jnp.dot(h, win_ref[...], preferred_element_type=f32) + bin_ref[...])
    a = a_ref[...]                                           # [TM, TM] block-diag Ahat
    # conv0: GraphConv(128->32, norm='both'):  Ahat @ (h @ W0) + b0, tanh
    h = jnp.tanh(
        jnp.dot(a, jnp.dot(h, w0_ref[...], preferred_element_type=f32),
                preferred_element_type=f32) + b0_ref[...])
    # conv2: GraphConv(32->32, norm='both')
    h = jnp.tanh(
        jnp.dot(a, jnp.dot(h, w1_ref[...], preferred_element_type=f32),
                preferred_element_type=f32) + b1_ref[...])
    # pool: dgl.sum_nodes on the batched graph == per-graph row sums,
    # expressed as a constant 0/1 pooling matmul (stays on the MXU).
    out_ref[...] = jnp.dot(p_ref[...], h, preferred_element_type=f32)   # [GPT, 32]


def sequential_mix_forward(h, a_hat, params, *, graphs_per_tile=16):
    """h: [B, N, feat] node features (B identical-structure graphs of N nodes);
    a_hat: [N, N] symmetric-normalized adjacency (D^-1/2 (A+I_ring) D^-1/2)."""
    win, b_in, w0, b0, w1, b1 = params
    B, N, feat = h.shape
    hid = win.shape[1]
    out_feats = w1.shape[1]

    # Zero-pad feature dim to a lane-aligned K (117 -> 128). Zeros contribute 0.
    feat_pad = ((feat + 127) // 128) * 128
    h = jnp.pad(h, ((0, 0), (0, 0), (0, feat_pad - feat)))
    win = jnp.pad(win, ((0, feat_pad - feat), (0, 0)))

    # Pad graph count up to a multiple of graphs_per_tile (padded graphs are
    # independent blocks; their outputs are sliced off below).
    gpt = graphs_per_tile
    b_pad = ((B + gpt - 1) // gpt) * gpt
    h = jnp.pad(h, ((0, b_pad - B), (0, 0), (0, 0)))

    nodes = h.reshape(b_pad * N, feat_pad)          # node-major [B*N, 128]
    tm = gpt * N                                    # nodes per tile (128)
    num_tiles = b_pad // gpt

    # Constant per-tile structure operands (identical for every tile).
    a_tile = jnp.kron(jnp.eye(gpt, dtype=jnp.float32), a_hat)               # [tm, tm]
    pool_mat = jnp.kron(jnp.eye(gpt, dtype=jnp.float32),
                        jnp.ones((1, N), jnp.float32))                      # [gpt, tm]

    const2d = lambda i: (0, 0)   # resident across all grid steps (DMA'd once)
    grid_spec = pltpu.PrefetchScalarGridSpec(
        num_scalar_prefetch=0,
        grid=(num_tiles,),
        in_specs=[
            pl.BlockSpec((tm, feat_pad), lambda i: (i, 0)),   # pipelined h tile
            pl.BlockSpec((tm, tm), const2d),                  # block-diag Ahat
            pl.BlockSpec((gpt, tm), const2d),                 # pooling matrix
            pl.BlockSpec((feat_pad, hid), const2d),           # Win (padded)
            pl.BlockSpec((1, hid), const2d),                  # b_in
            pl.BlockSpec((hid, out_feats), const2d),          # W0
            pl.BlockSpec((1, out_feats), const2d),            # b0
            pl.BlockSpec((out_feats, out_feats), const2d),    # W1
            pl.BlockSpec((1, out_feats), const2d),            # b1
        ],
        out_specs=pl.BlockSpec((gpt, out_feats), lambda i: (i, 0)),
    )
    out = pl.pallas_call(
        seqmix_kernel,
        out_shape=jax.ShapeDtypeStruct((b_pad, out_feats), jnp.float32),
        grid_spec=grid_spec,
        compiler_params=pltpu.CompilerParams(
            dimension_semantics=("parallel",)),
    )(nodes, a_tile, pool_mat, win, b_in, w0, b0, w1, b1)
    return out[:B]


def reference_forward(h, a_hat, params):
    """Pure-JAX reference of the same batched forward pass (unpadded)."""
    win, b_in, w0, b0, w1, b1 = params
    hp = jax.lax.Precision.HIGHEST
    x = jnp.tanh(jnp.einsum('bnf,fh->bnh', h, win, precision=hp) + b_in)
    x = jnp.tanh(jnp.einsum('nm,bmo->bno', a_hat,
                            jnp.einsum('bnh,ho->bno', x, w0, precision=hp),
                            precision=hp) + b0)
    x = jnp.tanh(jnp.einsum('nm,bmo->bno', a_hat,
                            jnp.einsum('bno,op->bnp', x, w1, precision=hp),
                            precision=hp) + b1)
    return x.sum(axis=1)                              # dgl.sum_nodes -> [B, out]


if __name__ == "__main__":
    N = 8          # nodes per graph
    FEAT = 117     # feature_units
    HID = 128      # input_units
    OUT = 32       # GraphConv out_feats
    B = 64         # number of graphs batched into one pallas_call

    key = jax.random.PRNGKey(0)
    k_h, k_win, k_bin, k_w0, k_b0, k_w1, k_b1 = jax.random.split(key, 7)

    # Node features for B graphs.
    h = jax.random.normal(k_h, (B, N, FEAT), dtype=jnp.float32)

    # Graph structure: ring + self-loops (no zero in-degrees), then DGL
    # GraphConv norm='both' symmetric normalization.
    idx = jnp.arange(N)
    adj = jnp.eye(N, dtype=jnp.float32)
    adj = adj.at[idx, (idx + 1) % N].set(1.0)
    adj = adj.at[(idx + 1) % N, idx].set(1.0)
    deg = adj.sum(axis=1)
    d_inv_sqrt = 1.0 / jnp.sqrt(deg)
    a_hat = d_inv_sqrt[:, None] * adj * d_inv_sqrt[None, :]

    # Deterministic synthetic parameters (module __init__ defines shapes only).
    scale = 0.1
    win = scale * jax.random.normal(k_win, (FEAT, HID), dtype=jnp.float32)
    b_in = scale * jax.random.normal(k_bin, (1, HID), dtype=jnp.float32)
    w0 = scale * jax.random.normal(k_w0, (HID, OUT), dtype=jnp.float32)
    b0 = scale * jax.random.normal(k_b0, (1, OUT), dtype=jnp.float32)
    w1 = scale * jax.random.normal(k_w1, (OUT, OUT), dtype=jnp.float32)
    b1 = scale * jax.random.normal(k_b1, (1, OUT), dtype=jnp.float32)
    params = (win, b_in, w0, b0, w1, b1)

    # TODO(synk): dropout is identity in eval mode; GATConv/other DGL conv
    # variants of the config grammar are not implemented in this realization.

    out = sequential_mix_forward(h, a_hat, params)
    out = jax.block_until_ready(out)

    ref = reference_forward(h, a_hat, params)
    assert out.shape == (B, OUT)
    assert jnp.allclose(out, ref, atol=1e-4, rtol=1e-4), (out, ref)
    print("KERNEL_OK")
</pallas_src>

<mosaic_0001>
module attributes {stable_mosaic.version = 11 : i64} {
  func.func @seqmix_kernel(%arg0: i32, %arg1: memref<128x128xf32, #tpu.memory_space<vmem>>, %arg2: memref<128x128xf32, #tpu.memory_space<vmem>>, %arg3: memref<16x128xf32, #tpu.memory_space<vmem>>, %arg4: memref<128x128xf32, #tpu.memory_space<vmem>>, %arg5: memref<1x128xf32, #tpu.memory_space<vmem>>, %arg6: memref<128x32xf32, #tpu.memory_space<vmem>>, %arg7: memref<1x32xf32, #tpu.memory_space<vmem>>, %arg8: memref<32x32xf32, #tpu.memory_space<vmem>>, %arg9: memref<1x32xf32, #tpu.memory_space<vmem>>, %arg10: memref<16x32xf32, #tpu.memory_space<vmem>>) attributes {dimension_semantics = [#tpu.dimension_semantics<parallel>], iteration_bounds = array<i64: 4>, scalar_prefetch = 0 : i64, scratch_operands = 0 : i64, tpu.core_type = #tpu.core_type<tc>, window_params = [{transform_indices = @transform_0, window_bounds = array<i64: 128, 128>}, {pipeline_mode = #tpu.pipeline_mode<synchronous>, transform_indices = @transform_1, window_bounds = array<i64: 128, 128>}, {pipeline_mode = #tpu.pipeline_mode<synchronous>, transform_indices = @transform_2, window_bounds = array<i64: 16, 128>}, {pipeline_mode = #tpu.pipeline_mode<synchronous>, transform_indices = @transform_3, window_bounds = array<i64: 128, 128>}, {pipeline_mode = #tpu.pipeline_mode<synchronous>, transform_indices = @transform_4, window_bounds = array<i64: 1, 128>}, {pipeline_mode = #tpu.pipeline_mode<synchronous>, transform_indices = @transform_5, window_bounds = array<i64: 128, 32>}, {pipeline_mode = #tpu.pipeline_mode<synchronous>, transform_indices = @transform_6, window_bounds = array<i64: 1, 32>}, {pipeline_mode = #tpu.pipeline_mode<synchronous>, transform_indices = @transform_7, window_bounds = array<i64: 32, 32>}, {pipeline_mode = #tpu.pipeline_mode<synchronous>, transform_indices = @transform_8, window_bounds = array<i64: 1, 32>}, {transform_indices = @transform_9, window_bounds = array<i64: 16, 32>}]} {
    %c0 = arith.constant 0 : index
    %c0_0 = arith.constant 0 : index
    %0 = vector.load %arg1[%c0, %c0_0] : memref<128x128xf32, #tpu.memory_space<vmem>>, vector<128x128xf32>
    %c0_1 = arith.constant 0 : index
    %c0_2 = arith.constant 0 : index
    %1 = vector.load %arg4[%c0_1, %c0_2] : memref<128x128xf32, #tpu.memory_space<vmem>>, vector<128x128xf32>
    %cst = arith.constant dense<0.000000e+00> : vector<128x128xf32>
    %2 = tpu.matmul %0, %1, %cst {dimension_numbers = #tpu.dot_dimension_numbers<[1], [0], [0], [1], [0, 0, 1, 1], [], []>} : vector<128x128xf32>, vector<128x128xf32>, vector<128x128xf32> -> vector<128x128xf32>
    %c0_3 = arith.constant 0 : index
    %c0_4 = arith.constant 0 : index
    %3 = vector.load %arg5[%c0_3, %c0_4] : memref<1x128xf32, #tpu.memory_space<vmem>>, vector<1x128xf32>
    %4 = vector.broadcast %3 : vector<1x128xf32> to vector<128x128xf32>
    %5 = arith.addf %2, %4 : vector<128x128xf32>
    %6 = math.tanh %5 : vector<128x128xf32>
    %c0_5 = arith.constant 0 : index
    %c0_6 = arith.constant 0 : index
    %7 = vector.load %arg2[%c0_5, %c0_6] : memref<128x128xf32, #tpu.memory_space<vmem>>, vector<128x128xf32>
    %c0_7 = arith.constant 0 : index
    %c0_8 = arith.constant 0 : index
    %8 = vector.load %arg6[%c0_7, %c0_8] : memref<128x32xf32, #tpu.memory_space<vmem>>, vector<128x32xf32>
    %cst_9 = arith.constant dense<0.000000e+00> : vector<128x32xf32>
    %9 = tpu.matmul %6, %8, %cst_9 {dimension_numbers = #tpu.dot_dimension_numbers<[1], [0], [0], [1], [0, 0, 1, 1], [], []>} : vector<128x128xf32>, vector<128x32xf32>, vector<128x32xf32> -> vector<128x32xf32>
    %cst_10 = arith.constant dense<0.000000e+00> : vector<128x32xf32>
    %10 = tpu.matmul %7, %9, %cst_10 {dimension_numbers = #tpu.dot_dimension_numbers<[1], [0], [0], [1], [0, 0, 1, 1], [], []>} : vector<128x128xf32>, vector<128x32xf32>, vector<128x32xf32> -> vector<128x32xf32>
    %c0_11 = arith.constant 0 : index
    %c0_12 = arith.constant 0 : index
    %11 = vector.load %arg7[%c0_11, %c0_12] : memref<1x32xf32, #tpu.memory_space<vmem>>, vector<1x32xf32>
    %12 = vector.broadcast %11 : vector<1x32xf32> to vector<128x32xf32>
    %13 = arith.addf %10, %12 : vector<128x32xf32>
    %14 = math.tanh %13 : vector<128x32xf32>
    %c0_13 = arith.constant 0 : index
    %c0_14 = arith.constant 0 : index
    %15 = vector.load %arg8[%c0_13, %c0_14] : memref<32x32xf32, #tpu.memory_space<vmem>>, vector<32x32xf32>
    %cst_15 = arith.constant dense<0.000000e+00> : vector<128x32xf32>
    %16 = tpu.matmul %14, %15, %cst_15 {dimension_numbers = #tpu.dot_dimension_numbers<[1], [0], [0], [1], [0, 0, 1, 1], [], []>} : vector<128x32xf32>, vector<32x32xf32>, vector<128x32xf32> -> vector<128x32xf32>
    %cst_16 = arith.constant dense<0.000000e+00> : vector<128x32xf32>
    %17 = tpu.matmul %7, %16, %cst_16 {dimension_numbers = #tpu.dot_dimension_numbers<[1], [0], [0], [1], [0, 0, 1, 1], [], []>} : vector<128x128xf32>, vector<128x32xf32>, vector<128x32xf32> -> vector<128x32xf32>
    %c0_17 = arith.constant 0 : index
    %c0_18 = arith.constant 0 : index
    %18 = vector.load %arg9[%c0_17, %c0_18] : memref<1x32xf32, #tpu.memory_space<vmem>>, vector<1x32xf32>
    %19 = vector.broadcast %18 : vector<1x32xf32> to vector<128x32xf32>
    %20 = arith.addf %17, %19 : vector<128x32xf32>
    %21 = math.tanh %20 : vector<128x32xf32>
    %c0_19 = arith.constant 0 : index
    %c0_20 = arith.constant 0 : index
    %22 = vector.load %arg3[%c0_19, %c0_20] : memref<16x128xf32, #tpu.memory_space<vmem>>, vector<16x128xf32>
    %cst_21 = arith.constant dense<0.000000e+00> : vector<16x32xf32>
    %23 = tpu.matmul %22, %21, %cst_21 {dimension_numbers = #tpu.dot_dimension_numbers<[1], [0], [0], [1], [0, 0, 1, 1], [], []>} : vector<16x128xf32>, vector<128x32xf32>, vector<16x32xf32> -> vector<16x32xf32>
    %c0_22 = arith.constant 0 : index
    %c0_23 = arith.constant 0 : index
    %24 = vector.load %arg10[%c0_22, %c0_23] : memref<16x32xf32, #tpu.memory_space<vmem>>, vector<16x32xf32>
    tpu.vector_store %arg10[%c0_22, %c0_23], %23 {strides = array<i32>} : memref<16x32xf32, #tpu.memory_space<vmem>>, vector<16x32xf32>,
    return
  }
  func.func @transform_0(%arg0: i32) -> (i32, i32) {
    %c0_i32 = arith.constant 0 : i32
    %c0_i32_0 = arith.constant 0 : i32
    return %arg0, %c0_i32 : i32, i32
  }
  func.func @transform_1(%arg0: i32) -> (i32, i32) {
    %c0_i32 = arith.constant 0 : i32
    %c0_i32_0 = arith.constant 0 : i32
    %c0_i32_1 = arith.constant 0 : i32
    return %c0_i32, %c0_i32_0 : i32, i32
  }
  func.func @transform_2(%arg0: i32) -> (i32, i32) {
    %c0_i32 = arith.constant 0 : i32
    %c0_i32_0 = arith.constant 0 : i32
    %c0_i32_1 = arith.constant 0 : i32
    return %c0_i32, %c0_i32_0 : i32, i32
  }
  func.func @transform_3(%arg0: i32) -> (i32, i32) {
    %c0_i32 = arith.constant 0 : i32
    %c0_i32_0 = arith.constant 0 : i32
    %c0_i32_1 = arith.constant 0 : i32
    return %c0_i32, %c0_i32_0 : i32, i32
  }
  func.func @transform_4(%arg0: i32) -> (i32, i32) {
    %c0_i32 = arith.constant 0 : i32
    %c0_i32_0 = arith.constant 0 : i32
    %c0_i32_1 = arith.constant 0 : i32
    return %c0_i32, %c0_i32_0 : i32, i32
  }
  func.func @transform_5(%arg0: i32) -> (i32, i32) {
    %c0_i32 = arith.constant 0 : i32
    %c0_i32_0 = arith.constant 0 : i32
    %c0_i32_1 = arith.constant 0 : i32
    return %c0_i32, %c0_i32_0 : i32, i32
  }
  func.func @transform_6(%arg0: i32) -> (i32, i32) {
    %c0_i32 = arith.constant 0 : i32
    %c0_i32_0 = arith.constant 0 : i32
    %c0_i32_1 = arith.constant 0 : i32
    return %c0_i32, %c0_i32_0 : i32, i32
  }
  func.func @transform_7(%arg0: i32) -> (i32, i32) {
    %c0_i32 = arith.constant 0 : i32
    %c0_i32_0 = arith.constant 0 : i32
    %c0_i32_1 = arith.constant 0 : i32
    return %c0_i32, %c0_i32_0 : i32, i32
  }
  func.func @transform_8(%arg0: i32) -> (i32, i32) {
    %c0_i32 = arith.constant 0 : i32
    %c0_i32_0 = arith.constant 0 : i32
    %c0_i32_1 = arith.constant 0 : i32
    return %c0_i32, %c0_i32_0 : i32, i32
  }
  func.func @transform_9(%arg0: i32) -> (i32, i32) {
    %c0_i32 = arith.constant 0 : i32
    %c0_i32_0 = arith.constant 0 : i32
    return %arg0, %c0_i32 : i32, i32
  }
}

</mosaic_0001>

<bundles_post_ra>
// kernel: tpu_custom_call.1
= control target key start
LH: loop header
LB: loop body
LE: loop exit
PB: predicated region body
PF: predicated region fallthrough
CT: control target
= control target key end

     0   :  { %s1778_s0 = inlined_call_operand.hbm [shape: f32[512,128], index: 0, kind: input, shape index: {}]   ;;  %s1779_s1 = inlined_call_operand.vmem [shape: f32[128,128], index: 1, kind: input, shape index: {}]   ;;  %s1780_s2 = inlined_call_operand.hbm [shape: f32[16,128], index: 2, kind: input, shape index: {}]   ;;  %s1781_s3 = inlined_call_operand.hbm [shape: f32[128,128], index: 3, kind: input, shape index: {}]   ;;  %s1782_s4 = inlined_call_operand.vmem [shape: f32[1,128], index: 4, kind: input, shape index: {}]   ;;  %s1783_s5 = inlined_call_operand.vmem [shape: f32[128,32], index: 5, kind: input, shape index: {}]   ;;  %s1784_s6 = inlined_call_operand.vmem [shape: f32[1,32], index: 6, kind: input, shape index: {}]   ;;  %s1785_s7 = inlined_call_operand.vmem [shape: f32[32,32], index: 7, kind: input, shape index: {}]   ;;  %s1786_s8 = inlined_call_operand.vmem [shape: f32[1,32], index: 8, kind: input, shape index: {}]   ;;  %s1787_s9 = inlined_call_operand.vmem [shape: f32[64,32], index: 9, kind: output, shape index: {}]  }
   0x1   :  { %1791 = sst [smem:[#allocation9_spill]] %s1780_s2 }
   0x2   :  { %14 = vsyncpa [#allocation3], 0 }
   0x3   :  { %16 = vsyncpa [#allocation3 + $0x1], 0 }
   0x4   :  { %17 = vsyncpa [#allocation5], 0  ;;  %s1404_s30 = smov 0   ;;  %s1406_s10 = smov 0  }
   0x5   :  { %s1408_s11 = smov 0   ;;  %s1410_s12 = smov 0  }
   0x6 LB: > { %s1788_s13 = sadd.s32 4294967295, %s1348_s12   ;;  %p43_p0 = scmp.ne.s32.totalorder %s1340_s10, %s1336_s30  ;;  %s1348_s12 = sphi %s1410_s12, %s1803_s12   ;;  %s1344_s11 = sphi %s1408_s11, %s1802_s11   ;;  %s1340_s10 = sphi %s1406_s10, %s1801_s10   ;;  %s1336_s30 = sphi %s1404_s30, %s1800_s30  }
   0x7   : > { %p1426_p1 = scmp.eq.s32.totalorder %s1788_s13, 0  ;;  %p1007_p2 = scmp.ge.s32.totalorder %s1348_s12, 1 }
   0x8   : > { %p248_p3 = scmp.lt.s32.totalorder %s1348_s12, 5  ;;  %s1794_s2 = sld [smem:[#allocation9_spill]] }
   0x9   : > { %p1434_p4 = por %p1426_p1, %p43_p0  ;;  %s1350_s20 = smov [#allocation4]  }
   0xa   : > { %p1441_p5 = pnand %p1007_p2, %p248_p3  ;;  %s264_s21 = sshll.u32 %s1350_s20, 4  ;;  %s265_s21 = int_to_ptr.vmem [resolvable:$true] %s264_s21 }
   0xb   : > { %s276_s24 = sshll.u32 %s1781_s3, 4  ;;  %s1789_s25 = smov 128   ;;  %s277_s24 = int_to_ptr.hbm [resolvable:$true] %s276_s24 }
   0xc   : > { %p1069_p6 = pneg %p1441_p5  ;;  %s1790_s26 = smov 8  }
   0xd   : > { %s1353_s27 = smov [#allocation6]   ;;  %s1459_s29 = sadd.s32 1, %s1348_s12  }
   0xe   : > { %s262_s18 = sshll.u32 %s1794_s2, 4  ;;  %p1070_p7 = pnand %p1069_p6, %p1426_p1  ;;  %s263_s18 = int_to_ptr.hbm [resolvable:$true] %s262_s18 }
   0xf   : > { %s278_s28 = sshll.u32 %s1353_s27, 4  ;;  %s30_s30 = sadd.s32 1, %s1344_s11  ;;  %s279_s28 = int_to_ptr.vmem [resolvable:$true] %s278_s28 }
  0x10   : > { %1072 = dma.hbm_to_vmem [thread:$0]  (!%p1070_p7), %s263_s18, 256, %s265_s21, [#allocation5], %s1789_s25, %s1789_s25, %s1790_s26  }
  0x11   : > { %1075 = dma.hbm_to_vmem [thread:$0]  (!%p1070_p7), %s277_s24, 2048, %s279_s28, [#allocation5], %s1789_s25, %s1789_s25, %s1790_s26  }
  0x12   : > { %s27_s16 = ssub.s32 %s1348_s12, %s1459_s29  ;;  %p37_p8 = scmp.ne.s32.totalorder %s1344_s11, %s1340_s10 }
  0x13   : > { %p28_p9 = scmp.eq.s32.totalorder %s27_s16, 0  ;;  %p38_p10 = scmp.eq.s32.totalorder %s1348_s12, 0 }
  0x14   : > { %s307_s17 = sand.u32 1, %s1344_s11   ;;  %p1082_p12 = scmp.lt.s32.totalorder %s1348_s12, 4 }
  0x15   : > { %s1469_s20 = scalar_select %p28_p9, %s1344_s11, %s30_s30  }
  0x16   : > { %p39_p11 = por %p38_p10, %p37_p8  ;;  %s1011_s18 = sshll.u32 %s307_s17, 7 }
  0x17   : > { %s1038_s21 = sshll.u32 %s1348_s12, 7  ;;  %s311_s28 = scalar_lea.vmem [#allocation2], %s1011_s18 }
  0x18   : > { %s316_s27 = scalar_lea.hbm %s1778_s0, %s1038_s21  ;;  %s319_s13 = sshll.u32 %s311_s28, 4  ;;  %s320_s13 = int_to_ptr.vmem [resolvable:$true] %s319_s13 }
  0x19   : > { %s317_s24 = sshll.u32 %s316_s27, 4  ;;  %p1476_p13 = pnand %p1082_p12, %p39_p11  ;;  %s318_s24 = int_to_ptr.hbm [resolvable:$true] %s317_s24 }
  0x1a   : > { %s308_s30 = scalar_lea.sflag [#allocation3], %s307_s17  ;;  %s1280_s16 = sshra.s32 %s318_s24, 4  ;;  %s1281_s16 = int_to_ptr.hbm [resolvable:$true] %s1280_s16 }
  0x1b   : > { %s1282_s26 = scalar_lea.hbm %s1281_s16, 128  ;;  %p1284_p2 = pneg %p1476_p13 }
  0x1c   : > { %p1283_p0 = scmp.ne.s32.totalorder %s1281_s16, %s1282_s26  ;;  %s1287_s18 = scalar_lea.hbm %s1778_s0, 512 }
  0x1d   : > { %p1288_p7 = scmp.lt.s32.totalorder %s1281_s16, %s1778_s0  ;;  %p1289_p8 = scmp.lt.s32.totalorder %s1287_s18, %s1282_s26 }
  0x1e   : > { %p1285_p3 = pnand %p1284_p2, %p1283_p0 }
  0x1f   : > { %p1290_p9 = por %p1289_p8, %p1288_p7 }
  0x20   : > { %p1286_p6 = pneg %p1285_p3 }
  0x22   : > { %p1291_p10 = pnand %p1290_p9, %p1286_p6 }
  0x24   : > { %1294 = shalt.err (!%p1291_p10)
}
  0x25   : > { %s1797_s17 = smov 8   ;;  %s1798_s28 = smov 128  }
  0x26   : > { %1079 = dma.hbm_to_vmem [thread:$0]  (!%p1476_p13), %s318_s24, 2048, %s320_s13, %s308_s30, %s1798_s28, %s1798_s28, %s1797_s17  }
  0x27   : > { %331 = sbr.rel (%p1441_p5) target bundleno = 1348 (0x544), region = 56  ;;  %s333_s21 = sand.u32 (!%p1441_p5), 1, %s1340_s10  }
  0x28   : > { %s1015_s22 = sshll.u32 (!%p1441_p5), %s333_s21, 7  ;;  %s334_s2 = scalar_lea.sflag (!%p1441_p5), [#allocation3], %s333_s21 }
  0x29   : > { %s1496_s23 = scalar_lea.vmem (!%p1441_p5), [#allocation2], %s1015_s22 }
  0x2c   : > { %1327 = dma.done.wait (%p1434_p4), %s334_s2, 2048  }
  0x2d   : > { %1329 = vsyncadd (%p1434_p4), %s334_s2, 4294965248 }
  0x2e   : > { %1331 = dma.done.wait (%p1426_p1), [#allocation5], 2304  }
  0x2f   : > { %1333 = vsyncadd (%p1426_p1), [#allocation5], 4294964992  ;;  %v421_v0 = vld [vmem:[#allocation6 + $0x78] sm:$0xff]  ;;  %v420_v1 = vld [vmem:[#allocation6 + $0x70] sm:$0xff]  ;;  %vm693_vm0 = vcmask 261120   ;;  %s1799_s27 = sadd.s32 4294967295, %s1348_s12  }
  0x30   : > { %426 = vmatpush.msra.mxu0 %v421_v0  ;;  %v419_v2 = vld [vmem:[#allocation6 + $0x68] sm:$0xff]  ;;  %v418_v3 = vld [vmem:[#allocation6 + $0x60] sm:$0xff]  ;;  %v417_v4 = vld [vmem:[#allocation6 + $0x58] sm:$0xff]  ;;  %s1018_s17 = sshll.u32 %s1799_s27, 1 }
  0x31   : > { %v416_v5 = vld [vmem:[#allocation6 + $0x50] sm:$0xff]  ;;  %v415_v6 = vld [vmem:[#allocation6 + $0x48] sm:$0xff]  ;;  %v414_v7 = vld [vmem:[#allocation6 + $0x40] sm:$0xff]  ;;  %p385_p1 = scmp.lt.s32.totalorder %s1018_s17, 7 }
  0x32   : > { %427 = vmatpush.msra.mxu0 %v420_v1  ;;  %v413_v8 = vld [vmem:[#allocation6 + $0x38] sm:$0xff]  ;;  %v412_v9 = vld [vmem:[#allocation6 + $0x30] sm:$0xff]  ;;  %v411_v10 = vld [vmem:[#allocation6 + $0x28] sm:$0xff] }
  0x33   : > { %v410_v11 = vld [vmem:[#allocation6 + $0x20] sm:$0xff]  ;;  %v409_v12 = vld [vmem:[#allocation6 + $0x18] sm:$0xff]  ;;  %v408_v13 = vld [vmem:[#allocation6 + $0x10] sm:$0xff]  ;;  %s1805_s17 = smov (!%p385_p1, %s1018_s17), 7 }
  0x34   : > { %428 = vmatpush.msra.mxu0 %v419_v2  ;;  %v407_v14 = vld [vmem:[#allocation6 + $0x8] sm:$0xff]  ;;  %v406_v15 = vld [vmem:[#allocation6] sm:$0xff]  ;;  %v390_v16 = vld [vmem:[%s1496_s23] sm:$0xff]  ;;  %s1019_s28 = sshll.u32 %s1805_s17, 3 }
  0x35   : > { %v391_v17 = vld [vmem:[%s1496_s23 + $0x8] sm:$0xff]  ;;  %v392_v18 = vld [vmem:[%s1496_s23 + $0x10] sm:$0xff]  ;;  %v393_v19 = vld [vmem:[%s1496_s23 + $0x18] sm:$0xff]  ;;  %s388_s2 = scalar_lea.vmem %s1787_s9, %s1019_s28 }
  0x36   : > { %429 = vmatpush.msra.mxu0 %v418_v3  ;;  %v394_v20 = vld [vmem:[%s1496_s23 + $0x20] sm:$0xff]  ;;  %v395_v21 = vld [vmem:[%s1496_s23 + $0x28] sm:$0xff]  ;;  %v396_v22 = vld [vmem:[%s1496_s23 + $0x30] sm:$0xff] }
  0x37   : > { %v397_v23 = vld [vmem:[%s1496_s23 + $0x38] sm:$0xff]  ;;  %v398_v24 = vld [vmem:[%s1496_s23 + $0x40] sm:$0xff]  ;;  %v399_v25 = vld [vmem:[%s1496_s23 + $0x48] sm:$0xff] }
  0x38   : > { %430 = vmatpush.msra.mxu0 %v417_v4  ;;  %v538_v26 = vld [vmem:[%s1783_s5 + $0x78] sm:$0xff]  ;;  %v537_v27 = vld [vmem:[%s1783_s5 + $0x70] sm:$0xff]  ;;  %v536_v28 = vld [vmem:[%s1783_s5 + $0x68] sm:$0xff] }
  0x39   : > { %539 = vmatpush.msra.mxu1 %v538_v26  ;;  %1039 = vmatpush.msra.mxu2 %v538_v26  ;;  %v535_v29 = vld [vmem:[%s1783_s5 + $0x60] sm:$0xff]  ;;  %v400_v30 = vld [vmem:[%s1496_s23 + $0x50] sm:$0xff]  ;;  %v534_v31 = vld [vmem:[%s1783_s5 + $0x58] sm:$0xff] }
  0x3a   : > { %431 = vmatpush.msra.mxu0 %v416_v5  ;;  %v533_v32 = vld [vmem:[%s1783_s5 + $0x50] sm:$0xff]  ;;  %v532_v33 = vld [vmem:[%s1783_s5 + $0x48] sm:$0xff]  ;;  %v531_v34 = vld [vmem:[%s1783_s5 + $0x40] sm:$0xff] }
  0x3b   : > { %540 = vmatpush.msra.mxu1 %v537_v27  ;;  %1040 = vmatpush.msra.mxu2 %v537_v27  ;;  %v401_v35 = vld [vmem:[%s1496_s23 + $0x58] sm:$0xff]  ;;  %v529_v37 = vld [vmem:[%s1783_s5 + $0x30] sm:$0xff]  ;;  %v528_v38 = vld [vmem:[%s1783_s5 + $0x28] sm:$0xff] }
  0x3c   : > { %432 = vmatpush.msra.mxu0 %v415_v6  ;;  %v530_v36 = vld [vmem:[%s1783_s5 + $0x38] sm:$0xff]  ;;  %v402_v39 = vld [vmem:[%s1496_s23 + $0x60] sm:$0xff]  ;;  %v525_v42 = vld [vmem:[%s1783_s5 + $0x10] sm:$0xff] }
  0x3d   : > { %541 = vmatpush.msra.mxu1 %v536_v28  ;;  %1041 = vmatpush.msra.mxu2 %v536_v28  ;;  %v527_v40 = vld [vmem:[%s1783_s5 + $0x20] sm:$0xff]  ;;  %v526_v41 = vld [vmem:[%s1783_s5 + $0x18] sm:$0xff]  ;;  %v524_v43 = vld [vmem:[%s1783_s5 + $0x8] sm:$0xff] }
  0x3e   : > { %433 = vmatpush.msra.mxu0 %v414_v7  ;;  %v403_v44 = vld [vmem:[%s1496_s23 + $0x68] sm:$0xff]  ;;  %v523_v45 = vld [vmem:[%s1783_s5] sm:$0xff]  ;;  %v404_v46 = vld [vmem:[%s1496_s23 + $0x70] sm:$0xff] }
  0x3f   : > { %542 = vmatpush.msra.mxu1 %v535_v29  ;;  %1042 = vmatpush.msra.mxu2 %v535_v29  ;;  %v405_v47 = vld [vmem:[%s1496_s23 + $0x78] sm:$0xff]  ;;  %v1573_v48 = vld [vmem:[%s1782_s4] ss:$0 sm:$0xff] }
  0x40   : > { %434 = vmatpush.msra.mxu0 %v413_v8 }
  0x41   : > { %543 = vmatpush.msra.mxu1 %v534_v31  ;;  %1043 = vmatpush.msra.mxu2 %v534_v31 }
  0x42   : > { %435 = vmatpush.msra.mxu0 %v412_v9 }
  0x43   : > { %544 = vmatpush.msra.mxu1 %v533_v32  ;;  %1044 = vmatpush.msra.mxu2 %v533_v32 }
  0x44   : > { %436 = vmatpush.msra.mxu0 %v411_v10 }
  0x45   : > { %545 = vmatpush.msra.mxu1 %v532_v33  ;;  %1045 = vmatpush.msra.mxu2 %v532_v33 }
  0x46   : > { %437 = vmatpush.msra.mxu0 %v410_v11 }
  0x47   : > { %546 = vmatpush.msra.mxu1 %v531_v34  ;;  %1046 = vmatpush.msra.mxu2 %v531_v34 }
  0x48   : > { %438 = vmatpush.msra.mxu0 %v409_v12 }
  0x49   : > { %547 = vmatpush.msra.mxu1 %v530_v36  ;;  %1047 = vmatpush.msra.mxu2 %v530_v36 }
  0x4a   : > { %439 = vmatpush.msra.mxu0 %v408_v13 }
  0x4b   : > { %548 = vmatpush.msra.mxu1 %v529_v37  ;;  %1048 = vmatpush.msra.mxu2 %v529_v37 }
  0x4c   : > { %440 = vmatpush.msra.mxu0 %v407_v14 }
  0x4d   : > { %549 = vmatpush.msra.mxu1 %v528_v38  ;;  %1049 = vmatpush.msra.mxu2 %v528_v38 }
  0x4e   : > { %441 = vmatpush.msra.mxu0 %v406_v15 }
  0x4f   : > { %442 = vmatmul.f32.vlgmr.msra.gmra.mxu0 %v390_v16  ;;  %550 = vmatpush.msra.mxu1 %v527_v40 }
  0x50   : > { %1050 = vmatpush.msra.mxu2 %v527_v40 }
  0x51   : > { %551 = vmatpush.msra.mxu1 %v526_v41 }
  0x52   : > { %1051 = vmatpush.msra.mxu2 %v526_v41 }
  0x53   : > { %552 = vmatpush.msra.mxu1 %v525_v42 }
  0x54   : > { %1052 = vmatpush.msra.mxu2 %v525_v42 }
  0x55   : > { %553 = vmatpush.msra.mxu1 %v524_v43 }
  0x56   : > { %1053 = vmatpush.msra.mxu2 %v524_v43 }
  0x57   : > { %445 = vmatmul.f32.gmra.mxu0 %v391_v17  ;;  %554 = vmatpush.msra.mxu1 %v523_v45 }
  0x58   : > { %1054 = vmatpush.msra.mxu2 %v523_v45 }
  0x5f   : > { %448 = vmatmul.f32.gmra.mxu0 %v392_v18 }
  0x67   : > { %451 = vmatmul.f32.gmra.mxu0 %v393_v19 }
  0x6f   : > { %454 = vmatmul.f32.gmra.mxu0 %v394_v20 }
  0x77   : > { %457 = vmatmul.f32.gmra.mxu0 %v395_v21 }
  0x7f   : > { %460 = vmatmul.f32.gmra.mxu0 %v396_v22 }
  0x87   : > { %463 = vmatmul.f32.gmra.mxu0 %v397_v23 }
  0x8f   : > { %466 = vmatmul.f32.gmra.mxu0 %v398_v24 }
  0x97   : > { %469 = vmatmul.f32.gmra.mxu0 %v399_v25 }
  0x9f   : > { %472 = vmatmul.f32.gmra.mxu0 %v400_v30 }
  0xa7   : > { %475 = vmatmul.f32.gmra.mxu0 %v401_v35 }
  0xaf   : > { %478 = vmatmul.f32.gmra.mxu0 %v402_v39 }
  0xb7   : > { %481 = vmatmul.f32.gmra.mxu0 %v403_v44 }
  0xbf   : > { %484 = vmatmul.f32.gmra.mxu0 %v404_v46 }
  0xc7   : > { %487 = vmatmul.f32.gmra.mxu0 %v405_v47 }
  0xcc   : > { %v443_v49 = vpop.f32.mrf.mxu0 }
  0xcd   : > { %v444_v50 = vadd.f32 %v1573_v48, %v443_v49  ;;  %v1594_v49 = vld [vmem:[%s1779_s1] sm:$0xff] }
  0xcf   : > { %1124 = vtanh.f32 %v444_v50  ;;  %v1600_v50 = vld [vmem:[%s1779_s1 + $0x8] sm:$0xff] }
  0xd4   : > { %v446_v51 = vpop.f32.mrf.mxu0 }
  0xd5   : > { %v1125_v52 = vpop.eup %1124  ;;  %v447_v53 = vadd.f32 %v1573_v48, %v446_v51  ;;  %v1606_v51 = vld [vmem:[%s1779_s1 + $0x10] sm:$0xff] }
  0xd6   : > { %555 = vmatmul.f32.vlgmr.msra.gmra.mxu1 %v1125_v52  ;;  %v1612_v52 = vld [vmem:[%s1779_s1 + $0x18] sm:$0xff] }
  0xd7   : > { %1126 = vtanh.f32 %v447_v53  ;;  %v1618_v53 = vld [vmem:[%s1779_s1 + $0x20] sm:$0xff] }
  0xdc   : > { %v449_v54 = vpop.f32.mrf.mxu0 }
  0xdd   : > { %v1127_v55 = vpop.eup %1126  ;;  %v450_v56 = vadd.f32 %v1573_v48, %v449_v54  ;;  %v1624_v54 = vld [vmem:[%s1779_s1 + $0x28] sm:$0xff] }
  0xde   : > { %558 = vmatmul.f32.gmra.mxu1 %v1127_v55  ;;  %v1630_v55 = vld [vmem:[%s1779_s1 + $0x30] sm:$0xff] }
  0xdf   : > { %1128 = vtanh.f32 %v450_v56  ;;  %v1636_v56 = vld [vmem:[%s1779_s1 + $0x38] sm:$0xff] }
  0xe4   : > { %v452_v57 = vpop.f32.mrf.mxu0 }
  0xe5   : > { %v1129_v58 = vpop.eup %1128  ;;  %v453_v59 = vadd.f32 %v1573_v48, %v452_v57  ;;  %v1642_v57 = vld [vmem:[%s1779_s1 + $0x40] sm:$0xff] }
  0xe6   : > { %561 = vmatmul.f32.gmra.mxu1 %v1129_v58  ;;  %v1648_v58 = vld [vmem:[%s1779_s1 + $0x48] sm:$0xff] }
  0xe7   : > { %1130 = vtanh.f32 %v453_v59  ;;  %v1654_v59 = vld [vmem:[%s1779_s1 + $0x50] sm:$0xff] }
  0xec   : > { %v455_v60 = vpop.f32.mrf.mxu0 }
  0xed   : > { %v1131_v61 = vpop.eup %1130  ;;  %v456_v62 = vadd.f32 %v1573_v48, %v455_v60  ;;  %v1660_v60 = vld [vmem:[%s1779_s1 + $0x58] sm:$0xff] }
  0xee   : > { %564 = vmatmul.f32.gmra.mxu1 %v1131_v61  ;;  %v1666_v61 = vld [vmem:[%s1779_s1 + $0x60] sm:$0xff] }
  0xef   : > { %1132 = vtanh.f32 %v456_v62  ;;  %v1672_v62 = vld [vmem:[%s1779_s1 + $0x68] sm:$0xff] }
  0xf4   : > { %v458_v63 = vpop.f32.mrf.mxu0 }
  0xf5   : > { %v1133_v0 = vpop.eup %1132  ;;  %v459_v1 = vadd.f32 %v1573_v48, %v458_v63  ;;  %v692_v63 = vld [vmem:[%s1785_s7 + $0x18] sm:$0xff] }
  0xf6   : > { %567 = vmatmul.f32.gmra.mxu1 %v1133_v0  ;;  %v691_v0 = vld [vmem:[%s1785_s7 + $0x10] sm:$0xff]  ;;  %1055 = vmatpush.msra.mxu3 %v692_v63 }
  0xf7   : > { %1134 = vtanh.f32 %v459_v1  ;;  %754 = vmatpush.msrb.mxu1 %v692_v63  ;;  %v690_v1 = vld [vmem:[%s1785_s7 + $0x8] sm:$0xff] }
  0xf8   : > { %1056 = vmatpush.msra.mxu3 %v691_v0 }
  0xf9   : > { %755 = vmatpush.msrb.mxu1 %v691_v0 }
  0xfa   : > { %1057 = vmatpush.msra.mxu3 %v690_v1 }
  0xfb   : > { %756 = vmatpush.msrb.mxu1 %v690_v1 }
  0xfc   : > { %v461_v2 = vpop.f32.mrf.mxu0 }
  0xfd   : > { %v1135_v3 = vpop.eup %1134  ;;  %v462_v4 = vadd.f32 %v1573_v48, %v461_v2  ;;  %v689_v2 = vld [vmem:[%s1785_s7] sm:$0xff] }
  0xfe   : > { %570 = vmatmul.f32.gmra.mxu1 %v1135_v3  ;;  %v1690_v3 = vld [vmem:[%s1779_s1 + $0x70] sm:$0xff]  ;;  %1058 = vmatpush.msra.mxu3 %v689_v2 }
  0xff   : > { %1136 = vtanh.f32 %v462_v4  ;;  %757 = vmatpush.msrb.mxu1 %v689_v2  ;;  %v1696_v4 = vld [vmem:[%s1779_s1 + $0x78] sm:$0xff] }
 0x104   : > { %v464_v5 = vpop.f32.mrf.mxu0 }
 0x105   : > { %v1137_v6 = vpop.eup %1136  ;;  %v465_v7 = vadd.f32 %v1573_v48, %v464_v5  ;;  %v1702_v5 = vld [vmem:[%s1784_s6] ss:$0 sm:$0xff] }
 0x106   : > { %573 = vmatmul.f32.gmra.mxu1 %v1137_v6 }
 0x107   : > { %1138 = vtanh.f32 %v465_v7 }
 0x10c   : > { %v467_v8 = vpop.f32.mrf.mxu0 }
 0x10d   : > { %v1139_v9 = vpop.eup %1138  ;;  %v468_v10 = vadd.f32 %v1573_v48, %v467_v8 }
 0x10e   : > { %576 = vmatmul.f32.gmra.mxu1 %v1139_v9 }
 0x10f   : > { %1140 = vtanh.f32 %v468_v10 }
 0x114   : > { %v470_v11 = vpop.f32.mrf.mxu0 }
 0x115   : > { %v1141_v12 = vpop.eup %1140  ;;  %v471_v13 = vadd.f32 %v1573_v48, %v470_v11 }
 0x116   : > { %579 = vmatmul.f32.gmra.mxu1 %v1141_v12 }
 0x117   : > { %1142 = vtanh.f32 %v471_v13 }
 0x11c   : > { %v473_v14 = vpop.f32.mrf.mxu0 }
 0x11d   : > { %v1143_v15 = vpop.eup %1142  ;;  %v474_v16 = vadd.f32 %v1573_v48, %v473_v14 }
 0x11e   : > { %582 = vmatmul.f32.gmra.mxu1 %v1143_v15 }
 0x11f   : > { %1144 = vtanh.f32 %v474_v16 }
 0x124   : > { %v476_v17 = vpop.f32.mrf.mxu0 }
 0x125   : > { %v1145_v18 = vpop.eup %1144  ;;  %v477_v19 = vadd.f32 %v1573_v48, %v476_v17 }
 0x126   : > { %585 = vmatmul.f32.gmra.mxu1 %v1145_v18 }
 0x127   : > { %1146 = vtanh.f32 %v477_v19 }
 0x12c   : > { %v479_v20 = vpop.f32.mrf.mxu0 }
 0x12d   : > { %v1147_v21 = vpop.eup %1146  ;;  %v480_v22 = vadd.f32 %v1573_v48, %v479_v20 }
 0x12e   : > { %588 = vmatmul.f32.vlgmr.msra.gmra.mxu2 %v1147_v21 }
 0x12f   : > { %1148 = vtanh.f32 %v480_v22 }
 0x134   : > { %v482_v23 = vpop.f32.mrf.mxu0 }
 0x135   : > { %v1149_v24 = vpop.eup %1148  ;;  %v483_v25 = vadd.f32 %v1573_v48, %v482_v23 }
 0x136   : > { %591 = vmatmul.f32.gmra.mxu2 %v1149_v24 }
 0x137   : > { %1150 = vtanh.f32 %v483_v25 }
 0x13c   : > { %v485_v26 = vpop.f32.mrf.mxu0 }
 0x13d   : > { %v1151_v27 = vpop.eup %1150  ;;  %v486_v28 = vadd.f32 %v1573_v48, %v485_v26 }
 0x13e   : > { %594 = vmatmul.f32.gmra.mxu2 %v1151_v27 }
 0x13f   : > { %1152 = vtanh.f32 %v486_v28 }
 0x144   : > { %v488_v29 = vpop.f32.mrf.mxu0 }
 0x145   : > { %v1153_v30 = vpop.eup %1152  ;;  %v489_v31 = vadd.f32 %v1573_v48, %v488_v29 }
 0x146   : > { %597 = vmatmul.f32.gmra.mxu2 %v1153_v30 }
 0x147   : > { %1154 = vtanh.f32 %v489_v31 }
 0x14d   : > { %v1155_v32 = vpop.eup %1154 }
 0x14e   : > { %600 = vmatmul.f32.gmra.mxu2 %v1155_v32 }
 0x153   : > { %v556_v33 = vpop.f32.mrf.mxu1 }
 0x15b   : > { %v559_v34 = vpop.f32.mrf.mxu1 }
 0x163   : > { %v562_v35 = vpop.f32.mrf.mxu1 }
 0x16b   : > { %v565_v36 = vpop.f32.mrf.mxu1 }
 0x173   : > { %v568_v37 = vpop.f32.mrf.mxu1 }
 0x17b   : > { %v571_v38 = vpop.f32.mrf.mxu1 }
 0x183   : > { %v574_v40 = vpop.f32.mrf.mxu1 }
 0x18b   : > { %v577_v42 = vpop.f32.mrf.mxu1 }
 0x193   : > { %v580_v44 = vpop.f32.mrf.mxu1 }
 0x19b   : > { %v583_v46 = vpop.f32.mrf.mxu1 }
 0x1a3   : > { %v586_v48 = vpop.f32.mrf.mxu1 }
 0x1b1   : > { %v589_v39 = vpop.f32.mrf.mxu2 }
 0x1b9   : > { %v592_v41 = vpop.f32.mrf.mxu2 }
 0x1c1   : > { %v595_v43 = vpop.f32.mrf.mxu2 }
 0x1c9   : > { %v598_v45 = vpop.f32.mrf.mxu2 }
 0x1d1   : > { %v601_v47 = vpop.f32.mrf.mxu2 }
 0x1d2   : > { %608 = vmatpush.msrb.mxu2 %v601_v47 }
 0x1d4   : > { %609 = vmatpush.msrb.mxu2 %v598_v45 }
 0x1d6   : > { %610 = vmatpush.msrb.mxu2 %v595_v43 }
 0x1d8   : > { %611 = vmatpush.msrb.mxu2 %v592_v41 }
 0x1da   : > { %612 = vmatpush.msrb.mxu2 %v589_v39 }
 0x1dc   : > { %613 = vmatpush.msrb.mxu2 %v586_v48 }
 0x1de   : > { %614 = vmatpush.msrb.mxu2 %v583_v46 }
 0x1e0   : > { %615 = vmatpush.msrb.mxu2 %v580_v44 }
 0x1e2   : > { %616 = vmatpush.msrb.mxu2 %v577_v42 }
 0x1e4   : > { %617 = vmatpush.msrb.mxu2 %v574_v40 }
 0x1e6   : > { %618 = vmatpush.msrb.mxu2 %v571_v38 }
 0x1e8   : > { %619 = vmatpush.msrb.mxu2 %v568_v37 }
 0x1ea   : > { %620 = vmatpush.msrb.mxu2 %v565_v36 }
 0x1ec   : > { %621 = vmatpush.msrb.mxu2 %v562_v35 }
 0x1ee   : > { %622 = vmatpush.msrb.mxu2 %v559_v34 }
 0x1f0   : > { %623 = vmatpush.msrb.mxu2 %v556_v33 }
 0x1f1   : > { %624 = vmatmul.f32.vlgmr.msrb.gmra.mxu2 %v1594_v49 }
 0x1f9   : > { %627 = vmatmul.f32.gmra.mxu2 %v1600_v50 }
 0x201   : > { %630 = vmatmul.f32.gmra.mxu2 %v1606_v51 }
 0x209   : > { %633 = vmatmul.f32.gmra.mxu2 %v1612_v52 }
 0x211   : > { %636 = vmatmul.f32.gmra.mxu2 %v1618_v53 }
 0x219   : > { %639 = vmatmul.f32.gmra.mxu2 %v1624_v54 }
 0x221   : > { %642 = vmatmul.f32.gmra.mxu2 %v1630_v55 }
 0x229   : > { %645 = vmatmul.f32.gmra.mxu2 %v1636_v56 }
 0x231   : > { %648 = vmatmul.f32.gmra.mxu2 %v1642_v57 }
 0x239   : > { %651 = vmatmul.f32.gmra.mxu2 %v1648_v58 }
 0x241   : > { %654 = vmatmul.f32.gmra.mxu2 %v1654_v59 }
 0x249   : > { %657 = vmatmul.f32.gmra.mxu2 %v1660_v60 }
 0x251   : > { %660 = vmatmul.f32.gmra.mxu2 %v1666_v61 }
 0x259   : > { %663 = vmatmul.f32.gmra.mxu2 %v1672_v62 }
 0x261   : > { %666 = vmatmul.f32.gmra.mxu2 %v1690_v3 }
 0x269   : > { %669 = vmatmul.f32.gmra.mxu2 %v1696_v4 }
 0x274   : > { %v625_v6 = vpop.f32.mrf.mxu2 }
 0x275   : > { %v626_v7 = vadd.f32 %v1702_v5, %v625_v6 }
 0x277   : > { %1156 = vtanh.f32 %v626_v7 }
 0x27c   : > { %v628_v8 = vpop.f32.mrf.mxu2 }
 0x27d   : > { %v1157_v9 = vpop.eup %1156  ;;  %v629_v10 = vadd.f32 %v1702_v5, %v628_v8 }
 0x27e   : > { %1020 = vmatmul.msk.f32.vlgmr.msrb.gmra.mxu1 %vm693_vm0, %v1157_v9 }
 0x27f   : > { %1158 = vtanh.f32 %v629_v10 }
 0x284   : > { %v631_v11 = vpop.f32.mrf.mxu2 }
 0x285   : > { %v1159_v12 = vpop.eup %1158  ;;  %v632_v13 = vadd.f32 %v1702_v5, %v631_v11 }
 0x286   : > { %1021 = vmatmul.msk.f32.gmra.mxu1 %vm693_vm0, %v1159_v12 }
 0x287   : > { %1160 = vtanh.f32 %v632_v13 }
 0x28c   : > { %v634_v14 = vpop.f32.mrf.mxu2 }
 0x28d   : > { %v1161_v15 = vpop.eup %1160  ;;  %v635_v16 = vadd.f32 %v1702_v5, %v634_v14 }
 0x28e   : > { %1022 = vmatmul.msk.f32.gmra.mxu1 %vm693_vm0, %v1161_v15 }
 0x28f   : > { %1162 = vtanh.f32 %v635_v16 }
 0x294   : > { %v637_v17 = vpop.f32.mrf.mxu2 }
 0x295   : > { %v1163_v18 = vpop.eup %1162  ;;  %v638_v19 = vadd.f32 %v1702_v5, %v637_v17 }
 0x296   : > { %1023 = vmatmul.msk.f32.gmra.mxu1 %vm693_vm0, %v1163_v18 }
 0x297   : > { %1164 = vtanh.f32 %v638_v19 }
 0x29c   : > { %v640_v20 = vpop.f32.mrf.mxu2 }
 0x29d   : > { %v1165_v21 = vpop.eup %1164  ;;  %v641_v22 = vadd.f32 %v1702_v5, %v640_v20 }
 0x29e   : > { %1024 = vmatmul.msk.f32.gmra.mxu1 %vm693_vm0, %v1165_v21 }
 0x29f   : > { %1166 = vtanh.f32 %v641_v22 }
 0x2a4   : > { %v643_v23 = vpop.f32.mrf.mxu2 }
 0x2a5   : > { %v1167_v24 = vpop.eup %1166  ;;  %v644_v25 = vadd.f32 %v1702_v5, %v643_v23 }
 0x2a6   : > { %1025 = vmatmul.msk.f32.gmra.mxu1 %vm693_vm0, %v1167_v24 }
 0x2a7   : > { %1168 = vtanh.f32 %v644_v25 }
 0x2ac   : > { %v646_v26 = vpop.f32.mrf.mxu2 }
 0x2ad   : > { %v1169_v27 = vpop.eup %1168  ;;  %v647_v28 = vadd.f32 %v1702_v5, %v646_v26 }
 0x2ae   : > { %1026 = vmatmul.msk.f32.gmra.mxu1 %vm693_vm0, %v1169_v27 }
 0x2af   : > { %1170 = vtanh.f32 %v647_v28 }
 0x2b4   : > { %v649_v29 = vpop.f32.mrf.mxu2 }
 0x2b5   : > { %v1171_v30 = vpop.eup %1170  ;;  %v650_v31 = vadd.f32 %v1702_v5, %v649_v29 }
 0x2b6   : > { %1027 = vmatmul.msk.f32.gmra.mxu1 %vm693_vm0, %v1171_v30 }
 0x2b7   : > { %1172 = vtanh.f32 %v650_v31 }
 0x2bc   : > { %v652_v32 = vpop.f32.mrf.mxu2 }
 0x2bd   : > { %v1173_v33 = vpop.eup %1172  ;;  %v653_v34 = vadd.f32 %v1702_v5, %v652_v32 }
 0x2be   : > { %1028 = vmatmul.msk.f32.gmra.mxu1 %vm693_vm0, %v1173_v33 }
 0x2bf   : > { %1174 = vtanh.f32 %v653_v34 }
 0x2c4   : > { %v655_v35 = vpop.f32.mrf.mxu2 }
 0x2c5   : > { %v1175_v36 = vpop.eup %1174  ;;  %v656_v37 = vadd.f32 %v1702_v5, %v655_v35 }
 0x2c6   : > { %1029 = vmatmul.msk.f32.vlgmr.msra.gmra.mxu3 %vm693_vm0, %v1175_v36 }
 0x2c7   : > { %1176 = vtanh.f32 %v656_v37 }
 0x2cc   : > { %v658_v38 = vpop.f32.mrf.mxu2 }
 0x2cd   : > { %v1177_v39 = vpop.eup %1176  ;;  %v659_v40 = vadd.f32 %v1702_v5, %v658_v38 }
 0x2ce   : > { %1030 = vmatmul.msk.f32.gmra.mxu3 %vm693_vm0, %v1177_v39 }
 0x2cf   : > { %1178 = vtanh.f32 %v659_v40 }
 0x2d4   : > { %v661_v41 = vpop.f32.mrf.mxu2 }
 0x2d5   : > { %v1179_v42 = vpop.eup %1178  ;;  %v662_v43 = vadd.f32 %v1702_v5, %v661_v41 }
 0x2d6   : > { %1031 = vmatmul.msk.f32.gmra.mxu3 %vm693_vm0, %v1179_v42 }
 0x2d7   : > { %1180 = vtanh.f32 %v662_v43 }
 0x2dc   : > { %v664_v44 = vpop.f32.mrf.mxu2 }
 0x2dd   : > { %v1181_v45 = vpop.eup %1180  ;;  %v665_v46 = vadd.f32 %v1702_v5, %v664_v44 }
 0x2de   : > { %1032 = vmatmul.msk.f32.gmra.mxu3 %vm693_vm0, %v1181_v45 }
 0x2df   : > { %1182 = vtanh.f32 %v665_v46 }
 0x2e4   : > { %v667_v47 = vpop.f32.mrf.mxu2 }
 0x2e5   : > { %v1183_v48 = vpop.eup %1182  ;;  %v668_v63 = vadd.f32 %v1702_v5, %v667_v47 }
 0x2e6   : > { %1033 = vmatmul.msk.f32.gmra.mxu3 %vm693_vm0, %v1183_v48 }
 0x2e7   : > { %1184 = vtanh.f32 %v668_v63 }
 0x2ec   : > { %v670_v0 = vpop.f32.mrf.mxu2 }
 0x2ed   : > { %v1185_v1 = vpop.eup %1184  ;;  %v671_v2 = vadd.f32 %v1702_v5, %v670_v0 }
 0x2ee   : > { %1034 = vmatmul.msk.f32.gmra.mxu3 %vm693_vm0, %v1185_v1 }
 0x2ef   : > { %1186 = vtanh.f32 %v671_v2 }
 0x2f5   : > { %v1187_v6 = vpop.eup %1186 }
 0x2f6   : > { %1035 = vmatmul.msk.f32.gmra.mxu3 %vm693_vm0, %v1187_v6 }
 0x2fb   : > { %v759_v7 = vpop.f32.mrf.mxu1 }
 0x303   : > { %v762_v8 = vpop.f32.mrf.mxu1 }
 0x30b   : > { %v765_v10 = vpop.f32.mrf.mxu1 }
 0x313   : > { %v768_v12 = vpop.f32.mrf.mxu1 }
 0x31b   : > { %v771_v14 = vpop.f32.mrf.mxu1 }
 0x323   : > { %v774_v16 = vpop.f32.mrf.mxu1 }
 0x32b   : > { %v777_v19 = vpop.f32.mrf.mxu1 }
 0x333   : > { %v780_v20 = vpop.f32.mrf.mxu1 }
 0x33b   : > { %v783_v21 = vpop.f32.mrf.mxu1 }
 0x349   : > { %v786_v9 = vpop.f32.mrf.mxu3 }
 0x351   : > { %v789_v11 = vpop.f32.mrf.mxu3 }
 0x359   : > { %v792_v13 = vpop.f32.mrf.mxu3 }
 0x361   : > { %v795_v15 = vpop.f32.mrf.mxu3 }
 0x369   : > { %v798_v17 = vpop.f32.mrf.mxu3 }
 0x371   : > { %v801_v18 = vpop.f32.mrf.mxu3 }
 0x379   : > { %v804_v5 = vpop.f32.mrf.mxu3 }
 0x37a   : > { %811 = vmatpush.msrb.mxu3 %v804_v5 }
 0x37c   : > { %812 = vmatpush.msrb.mxu3 %v801_v18 }
 0x37e   : > { %813 = vmatpush.msrb.mxu3 %v798_v17 }
 0x380   : > { %814 = vmatpush.msrb.mxu3 %v795_v15 }
 0x382   : > { %815 = vmatpush.msrb.mxu3 %v792_v13 }
 0x384   : > { %816 = vmatpush.msrb.mxu3 %v789_v11 }
 0x386   : > { %817 = vmatpush.msrb.mxu3 %v786_v9  ;;  %v893_v9 = vld [vmem:[#allocation4 + $0x8] sm:$0xff] }
 0x388   : > { %818 = vmatpush.msrb.mxu3 %v783_v21 }
 0x38a   : > { %819 = vmatpush.msrb.mxu3 %v780_v20 }
 0x38c   : > { %820 = vmatpush.msrb.mxu3 %v777_v19 }
 0x38e   : > { %821 = vmatpush.msrb.mxu3 %v774_v16 }
 0x390   : > { %822 = vmatpush.msrb.mxu3 %v771_v14 }
 0x392   : > { %823 = vmatpush.msrb.mxu3 %v768_v12 }
 0x394   : > { %824 = vmatpush.msrb.mxu3 %v765_v10 }
 0x396   : > { %825 = vmatpush.msrb.mxu3 %v762_v8 }
 0x398   : > { %826 = vmatpush.msrb.mxu3 %v759_v7  ;;  %v892_v7 = vld [vmem:[#allocation4] sm:$0xff] }
 0x399   : > { %827 = vmatmul.f32.vlgmr.msrb.gmra.mxu3 %v1594_v49 }
 0x3a1   : > { %830 = vmatmul.f32.gmra.mxu3 %v1600_v50 }
 0x3a9   : > { %833 = vmatmul.f32.gmra.mxu3 %v1606_v51 }
 0x3b1   : > { %836 = vmatmul.f32.gmra.mxu3 %v1612_v52 }
 0x3b9   : > { %839 = vmatmul.f32.gmra.mxu3 %v1618_v53 }
 0x3c1   : > { %842 = vmatmul.f32.gmra.mxu3 %v1624_v54 }
 0x3c9   : > { %845 = vmatmul.f32.gmra.mxu3 %v1630_v55 }
 0x3d1   : > { %848 = vmatmul.f32.gmra.mxu3 %v1636_v56 }
 0x3d9   : > { %851 = vmatmul.f32.gmra.mxu3 %v1642_v57 }
 0x3e1   : > { %854 = vmatmul.f32.gmra.mxu3 %v1648_v58 }
 0x3e9   : > { %857 = vmatmul.f32.gmra.mxu3 %v1654_v59 }
 0x3f1   : > { %860 = vmatmul.f32.gmra.mxu3 %v1660_v60 }
 0x3f9   : > { %863 = vmatmul.f32.gmra.mxu3 %v1666_v61 }
 0x401   : > { %866 = vmatmul.f32.gmra.mxu3 %v1672_v62 }
 0x409   : > { %869 = vmatmul.f32.gmra.mxu3 %v1690_v3  ;;  %v1123_v3 = vld [vmem:[%s1786_s8] ss:$0 sm:$0xff] }
 0x411   : > { %872 = vmatmul.f32.gmra.mxu3 %v1696_v4 }
 0x41c   : > { %v1752_v49 = vpop.f32.mrf.mxu3 }
 0x41d   : > { %v829_v63 = vadd.f32 %v1123_v3, %v1752_v49 }
 0x424   : > { %v831_v50 = vpop.f32.mrf.mxu3 }
 0x425   : > { %v832_v47 = vadd.f32 %v1123_v3, %v831_v50 }
 0x42c   : > { %v834_v51 = vpop.f32.mrf.mxu3 }
 0x42d   : > { %v835_v45 = vadd.f32 %v1123_v3, %v834_v51 }
 0x434   : > { %v837_v52 = vpop.f32.mrf.mxu3 }
 0x435   : > { %v838_v43 = vadd.f32 %v1123_v3, %v837_v52 }
 0x43c   : > { %v840_v53 = vpop.f32.mrf.mxu3 }
 0x43d   : > { %v841_v41 = vadd.f32 %v1123_v3, %v840_v53 }
 0x444   : > { %v843_v54 = vpop.f32.mrf.mxu3 }
 0x445   : > { %v844_v39 = vadd.f32 %v1123_v3, %v843_v54 }
 0x44c   : > { %v846_v55 = vpop.f32.mrf.mxu3 }
 0x44d   : > { %v847_v37 = vadd.f32 %v1123_v3, %v846_v55 }
 0x454   : > { %v849_v56 = vpop.f32.mrf.mxu3 }
 0x455   : > { %v850_v35 = vadd.f32 %v1123_v3, %v849_v56 }
 0x45c   : > { %v852_v57 = vpop.f32.mrf.mxu3 }
 0x45d   : > { %v853_v33 = vadd.f32 %v1123_v3, %v852_v57 }
 0x464   : > { %v855_v58 = vpop.f32.mrf.mxu3 }
 0x465   : > { %v856_v31 = vadd.f32 %v1123_v3, %v855_v58 }
 0x46c   : > { %v858_v59 = vpop.f32.mrf.mxu3 }
 0x46d   : > { %v859_v29 = vadd.f32 %v1123_v3, %v858_v59 }
 0x474   : > { %v861_v60 = vpop.f32.mrf.mxu3 }
 0x475   : > { %v862_v27 = vadd.f32 %v1123_v3, %v861_v60 }
 0x47c   : > { %v864_v61 = vpop.f32.mrf.mxu3 }
 0x47d   : > { %v865_v26 = vadd.f32 %v1123_v3, %v864_v61 }
 0x484   : > { %v867_v22 = vpop.f32.mrf.mxu3 }
 0x485   : > { %v868_v25 = vadd.f32 %v1123_v3, %v867_v22 }
 0x48c   : > { %v870_v62 = vpop.f32.mrf.mxu3 }
 0x48d   : > { %v871_v23 = vadd.f32 %v1123_v3, %v870_v62 }
 0x494   : > { %v873_v4 = vpop.f32.mrf.mxu3 }
 0x495   : > { %v874_v24 = vadd.f32 %v1123_v3, %v873_v4 }
 0x497   : > { %1188 = vtanh.f32 %v874_v24 }
 0x498   : > { %1190 = vtanh.f32 %v871_v23 }
 0x499   : > { %1192 = vtanh.f32 %v868_v25 }
 0x49a   : > { %1194 = vtanh.f32 %v865_v26 }
 0x49b   : > { %1196 = vtanh.f32 %v862_v27 }
 0x49c   : > { %1198 = vtanh.f32 %v859_v29 }
 0x49d   : > { %v1189_v28 = vpop.eup %1188  ;;  %1200 = vtanh.f32 %v856_v31 }
 0x49e   : > { %894 = vmatpush.msrb.mxu0 %v1189_v28  ;;  %v1191_v30 = vpop.eup %1190  ;;  %1202 = vtanh.f32 %v853_v33 }
 0x49f   : > { %v1193_v32 = vpop.eup %1192  ;;  %1204 = vtanh.f32 %v850_v35 }
 0x4a0   : > { %895 = vmatpush.msrb.mxu0 %v1191_v30  ;;  %v1195_v34 = vpop.eup %1194  ;;  %1206 = vtanh.f32 %v847_v37 }
 0x4a1   : > { %v1197_v36 = vpop.eup %1196  ;;  %1208 = vtanh.f32 %v844_v39 }
 0x4a2   : > { %896 = vmatpush.msrb.mxu0 %v1193_v32  ;;  %v1199_v38 = vpop.eup %1198  ;;  %1210 = vtanh.f32 %v841_v41 }
 0x4a3   : > { %v1201_v40 = vpop.eup %1200  ;;  %1212 = vtanh.f32 %v838_v43 }
 0x4a4   : > { %897 = vmatpush.msrb.mxu0 %v1195_v34  ;;  %v1203_v42 = vpop.eup %1202  ;;  %1214 = vtanh.f32 %v835_v45 }
 0x4a5   : > { %v1205_v44 = vpop.eup %1204  ;;  %1216 = vtanh.f32 %v832_v47 }
 0x4a6   : > { %898 = vmatpush.msrb.mxu0 %v1197_v36  ;;  %v1207_v46 = vpop.eup %1206  ;;  %1218 = vtanh.f32 %v829_v63 }
 0x4a7   : > { %v1209_v48 = vpop.eup %1208 }
 0x4a8   : > { %899 = vmatpush.msrb.mxu0 %v1199_v38  ;;  %v1211_v0 = vpop.eup %1210 }
 0x4a9   : > { %v1213_v1 = vpop.eup %1212 }
 0x4aa   : > { %900 = vmatpush.msrb.mxu0 %v1201_v40  ;;  %v1215_v2 = vpop.eup %1214 }
 0x4ab   : > { %v1217_v6 = vpop.eup %1216 }
 0x4ac   : > { %901 = vmatpush.msrb.mxu0 %v1203_v42  ;;  %v1219_v8 = vpop.eup %1218 }
 0x4ae   : > { %902 = vmatpush.msrb.mxu0 %v1205_v44 }
 0x4b0   : > { %903 = vmatpush.msrb.mxu0 %v1207_v46 }
 0x4b2   : > { %904 = vmatpush.msrb.mxu0 %v1209_v48 }
 0x4b4   : > { %905 = vmatpush.msrb.mxu0 %v1211_v0 }
 0x4b6   : > { %906 = vmatpush.msrb.mxu0 %v1213_v1 }
 0x4b8   : > { %907 = vmatpush.msrb.mxu0 %v1215_v2 }
 0x4ba   : > { %908 = vmatpush.msrb.mxu0 %v1217_v6 }
 0x4bc   : > { %909 = vmatpush.msrb.mxu0 %v1219_v8 }
 0x4bd   : > { %910 = vmatmul.f32.vlgmr.msrb.gmra.mxu0 %v892_v7 }
 0x4c5   : > { %913 = vmatmul.f32.gmra.mxu0 %v893_v9 }
 0x53a   : > { %v911_v10 = vpop.f32.mrf.mxu0 }
 0x53b   : > { %917 = vst.msk [vmem:[%s388_s2] sm:$0xff] %vm693_vm0, %v911_v10 }
 0x542   : > { %v914_v11 = vpop.f32.mrf.mxu0 }
 0x543   : > { %918 = vst.msk [vmem:[%s388_s2 + $0x8] sm:$0xff] %vm693_vm0, %v914_v11 }
 0x544 PF: > { %p20_p4 = scmp.ge.s32.totalorder %s1459_s29, 6   ;;  %s1800_s30 = smov %s1340_s10 }
 0x545   : > { %s1801_s10 = smov %s1344_s11  ;;  %s1802_s11 = smov %s1469_s20 }
 0x546   : > { %s1803_s12 = smov %s1459_s29  ;;  %22 = sbr.rel (!%p20_p4) target bundleno = 6 (0x6), region = 104 }
 0x54b   :  { %941 = vsyncpa [#allocation3], 1 }
 0x54c   :  { %943 = vsyncpa [#allocation3 + $0x1], 1 }
 0x54d   :  { %944 = vsyncpa [#allocation5], 1 }

</bundles_post_ra>
